<compile_context>
chip_gen: v7x
topology: tpu7x:2x2x1
jax: 0.10.0
libtpu: 0.0.40
codegen_flags: <defaults>
</compile_context>

<pallas_src>
import functools

import jax
import jax.numpy as jnp
from jax.experimental import pallas as pl
from jax.experimental.pallas import tpu as pltpu


# ----------------------------------------------------------------------------
# Kernel
# ----------------------------------------------------------------------------
def _concat_ce_kernel(x_ref, out_ref, acc_ref, *,
                      num_classes, n_rows, tile_n, steps_per_shard, eps):
    s = pl.program_id(0)          # shard (parallel; one per TensorCore on v7x)
    j = pl.program_id(1)          # step within the shard (serial reduction)

    @pl.when(j == 0)
    def _init():
        acc_ref[...] = jnp.zeros_like(acc_ref)

    x = x_ref[...].astype(jnp.float32)                    # (tile_n, 2*nc)
    z = x - jnp.max(x, axis=-1, keepdims=True)
    e = jnp.exp(z)                                        # one exp / element (EUP)
    denom = jnp.sum(e, axis=-1, keepdims=True)            # (tile_n, 1)
    p = e * pl.reciprocal(denom, approx=False)            # softmax probabilities
    logp = z - jnp.log(denom)                             # log-softmax, no 2nd exp/log

    # TODO(synk): process_zero_values() is not defined in the provided spec;
    # assumed "replace exact zeros (softmax underflow) with eps=1e-6".
    is_zero = p == 0.0
    p_safe = jnp.where(is_zero, jnp.float32(eps), p)
    logp_safe = jnp.where(is_zero, jnp.log(jnp.float32(eps)), logp)

    # sum_c[ log(p_s)*p_t + log(p_t)*p_s ] == sum over the full class axis of
    # logp * roll(p, num_classes): the two halves share the same per-row softmax
    # denominator, so a single XLU lane rotation replaces four mid-lane slices.
    term = logp_safe * pltpu.roll(p_safe, num_classes, axis=1)

    # Mask logical rows beyond the batch (partial last block and clamped
    # over-the-end blocks of the sharded grid) BEFORE any cross-row reduction.
    blk = s * steps_per_shard + j
    row_ids = blk * tile_n + jax.lax.broadcasted_iota(jnp.int32, (tile_n, 1), 0)
    term = jnp.where(row_ids < n_rows, term, 0.0)

    # Vector-form accumulation: per-shard (1, C) f32 accumulator in VMEM.
    acc_ref[...] += jnp.sum(term, axis=0, keepdims=True)

    @pl.when(j == pl.num_programs(1) - 1)
    def _finalize():
        out_ref[0, 0] = jnp.sum(acc_ref[...])             # per-shard partial sum


# ----------------------------------------------------------------------------
# Wrapper
# ----------------------------------------------------------------------------
def _choose_tile_n(n, c, itemsize, tile_n=None):
    mult = 16 if itemsize == 2 else 8                      # bf16 needs (16,128)
    if tile_n is not None:
        tn = max(mult, -(-tile_n // mult) * mult)
        return n if tn >= n else tn
    # Size blocks by bytes: ~4 MiB of f32 work per tile (~16k rows at C=62).
    target_f32_bytes = 4 * 1024 * 1024
    rows = max(mult, (target_f32_bytes // (4 * c)) // mult * mult)
    return n if rows >= n else rows


def concatenated_ce_loss(x, num_classes, *, eps=1e-6, tile_n=None, num_shards=2):
    n, c = x.shape
    assert c == 2 * num_classes, "input must be (batch, 2*num_classes)"
    itemsize = jnp.dtype(x.dtype).itemsize
    tn = _choose_tile_n(n, c, itemsize, tile_n)
    grid_n = pl.cdiv(n, tn)
    shards = num_shards if grid_n >= num_shards else 1
    steps = pl.cdiv(grid_n, shards)

    kernel = functools.partial(
        _concat_ce_kernel, num_classes=num_classes, n_rows=n, tile_n=tn,
        steps_per_shard=steps, eps=eps)

    # VMEM budget: 2x double-buffered input block + ~7 live f32 tile-sized
    # intermediates + slack; capped at 56 MiB so it also fits v7x (64 MiB/TC),
    # raised above the 16/32 MiB scoped defaults on v5e/v6e when tiles are big.
    f32_tile = tn * c * 4
    in_tile = tn * c * itemsize
    vmem_limit = int(min(56 * 1024 * 1024,
                         max(32 * 1024 * 1024,
                             2 * in_tile + 7 * f32_tile + (4 << 20))))

    def x_index_map(s, j):
        # Clamp over-the-end block indices (odd grid_n split over 2 shards);
        # the kernel masks those rows out by their logical row id.
        return (jnp.minimum(s * steps + j, grid_n - 1), 0)

    partials = pl.pallas_call(
        kernel,
        out_shape=jax.ShapeDtypeStruct((shards, 1), jnp.float32),
        grid=(shards, steps),
        in_specs=[pl.BlockSpec((tn, c), x_index_map)],
        out_specs=pl.BlockSpec((1, 1), lambda s, j: (s, 0),
                               memory_space=pltpu.MemorySpace.SMEM),
        scratch_shapes=[pltpu.VMEM((1, c), jnp.float32)],
        compiler_params=pltpu.CompilerParams(
            dimension_semantics=("parallel", "arbitrary"),
            vmem_limit_bytes=vmem_limit),
        cost_estimate=pl.CostEstimate(
            flops=10 * n * c,
            transcendentals=n * c + 2 * n,
            bytes_accessed=n * c * itemsize + 4 * shards),
    )(x)

    # loss = -0.5 * (1/N) * sum_n sum_c [log(p_s)*p_t + log(p_t)*p_s]
    return (jnp.float32(-0.5) / n) * jnp.sum(partials)


# ----------------------------------------------------------------------------
# Pure-JAX reference (mirrors the PyTorch forward)
# ----------------------------------------------------------------------------
def _ref_loss(x, num_classes, eps=1e-6):
    prob = jax.nn.softmax(x.astype(jnp.float32), axis=1)
    p_s = prob[:, :num_classes]
    p_t = prob[:, num_classes:]
    p_s = jnp.where(p_s == 0, eps, p_s)
    p_t = jnp.where(p_t == 0, eps, p_t)
    loss = (-jnp.mean(jnp.sum(jnp.log(p_s) * p_t, axis=1))
            - jnp.mean(jnp.sum(jnp.log(p_t) * p_s, axis=1)))
    return 0.5 * loss


if __name__ == "__main__":
    key = jax.random.PRNGKey(0)
    k1, k2, k3 = jax.random.split(key, 3)

    # 1) small shape: batch=8, num_classes=4 -> C=8; single block, single shard.
    nc1 = 4
    x1 = jax.random.normal(k1, (8, 2 * nc1), jnp.float32)
    out1 = jax.block_until_ready(concatenated_ce_loss(x1, nc1))
    ref1 = _ref_loss(x1, nc1)
    assert jnp.allclose(out1, ref1, rtol=1e-5, atol=1e-6), (float(out1), float(ref1))

    # 2) default num_classes=31 (C=62), batch=40, tile_n=16 -> grid_n=3 split
    #    over 2 shards (2x2 grid): exercises the partial last block AND the
    #    clamped over-the-end block of the sharded grid.
    nc2 = 31
    x2 = jax.random.normal(k2, (40, 2 * nc2), jnp.float32) * 3.0
    out2 = jax.block_until_ready(concatenated_ce_loss(x2, nc2, tile_n=16))
    ref2 = _ref_loss(x2, nc2)
    assert jnp.allclose(out2, ref2, rtol=1e-5, atol=1e-6), (float(out2), float(ref2))

    # 3) bf16 logits, batch=24, tile_n=16 -> 2 shards x 1 step, bf16 sublane
    #    multiple of 16, partial second block.
    nc3 = 31
    x3 = (jax.random.normal(k3, (24, 2 * nc3), jnp.float32) * 2.0).astype(jnp.bfloat16)
    out3 = jax.block_until_ready(concatenated_ce_loss(x3, nc3, tile_n=16))
    ref3 = _ref_loss(x3, nc3)
    assert jnp.allclose(out3, ref3, rtol=1e-5, atol=1e-5), (float(out3), float(ref3))

    print("KERNEL_OK")
</pallas_src>

<mosaic_0001>
module attributes {stable_mosaic.version = 11 : i64} {
  func.func @_concat_ce_kernel(%arg0: i32, %arg1: i32, %arg2: memref<8x8xf32, #tpu.memory_space<vmem>>, %arg3: memref<1x1xf32, #tpu.memory_space<smem>>, %arg4: memref<1x8xf32, #tpu.memory_space<vmem>>) attributes {dimension_semantics = [#tpu.dimension_semantics<parallel>, #tpu.dimension_semantics<arbitrary>], iteration_bounds = array<i64: 1, 1>, scalar_prefetch = 0 : i64, scratch_operands = 1 : i64, tpu.core_type = #tpu.core_type<tc>, window_params = [{transform_indices = @transform_0, window_bounds = array<i64: 8, 8>}, {transform_indices = @transform_1, window_bounds = array<i64: 1, 1>}]} {
    %c0_i32 = arith.constant 0 : i32
    %0 = arith.cmpi eq, %arg1, %c0_i32 : i32
    %1 = arith.extui %0 : i1 to i32
    %c0_i32_0 = arith.constant 0 : i32
    %2 = arith.cmpi ne, %1, %c0_i32_0 : i32
    scf.if %2 {
      %cst_15 = arith.constant 0.000000e+00 : f32
      %46 = vector.broadcast %cst_15 : f32 to vector<1x8xf32>
      %c0_16 = arith.constant 0 : index
      %c0_17 = arith.constant 0 : index
      %47 = vector.load %arg4[%c0_16, %c0_17] : memref<1x8xf32, #tpu.memory_space<vmem>>, vector<1x8xf32>
      tpu.vector_store %arg4[%c0_16, %c0_17], %46 {strides = array<i32>} : memref<1x8xf32, #tpu.memory_space<vmem>>, vector<1x8xf32>,
    } else {
    }
    %c0 = arith.constant 0 : index
    %c0_1 = arith.constant 0 : index
    %3 = vector.load %arg2[%c0, %c0_1] : memref<8x8xf32, #tpu.memory_space<vmem>>, vector<8x8xf32>
    %cst = arith.constant dense<0xFF800000> : vector<8xf32>
    %4 = vector.multi_reduction <maximumf>, %3, %cst [1] : vector<8x8xf32> to vector<8xf32>
    %5 = vector.shape_cast %4 : vector<8xf32> to vector<8x1xf32>
    %6 = vector.broadcast %5 : vector<8x1xf32> to vector<8x8xf32>
    %7 = arith.subf %3, %6 : vector<8x8xf32>
    %8 = math.exp %7 : vector<8x8xf32>
    %cst_2 = arith.constant dense<0.000000e+00> : vector<8xf32>
    %9 = vector.multi_reduction <add>, %8, %cst_2 [1] : vector<8x8xf32> to vector<8xf32>
    %10 = vector.shape_cast %9 : vector<8xf32> to vector<8x1xf32>
    %11 = tpu.reciprocal %10 : vector<8x1xf32> -> vector<8x1xf32>
    %12 = vector.broadcast %11 : vector<8x1xf32> to vector<8x8xf32>
    %13 = arith.mulf %8, %12 : vector<8x8xf32>
    %14 = math.log %10 : vector<8x1xf32>
    %15 = vector.broadcast %14 : vector<8x1xf32> to vector<8x8xf32>
    %16 = arith.subf %7, %15 : vector<8x8xf32>
    %cst_3 = arith.constant 0.000000e+00 : f32
    %17 = vector.broadcast %cst_3 : f32 to vector<8x8xf32>
    %18 = arith.cmpf oeq, %13, %17 : vector<8x8xf32>
    %cst_4 = arith.constant 9.99999997E-7 : f32
    %19 = vector.broadcast %cst_4 : f32 to vector<8x8xf32>
    %20 = arith.select %18, %19, %13 : vector<8x8xi1>, vector<8x8xf32>
    %cst_5 = arith.constant 9.99999997E-7 : f32
    %21 = math.log %cst_5 : f32
    %22 = vector.broadcast %21 : f32 to vector<8x8xf32>
    %23 = arith.select %18, %22, %16 : vector<8x8xi1>, vector<8x8xf32>
    %c4_i32 = arith.constant 4 : i32
    %24 = tpu.dynamic_rotate %20 by %c4_i32 dim 1 : vector<8x8xf32>, i32 -> vector<8x8xf32>
    %25 = arith.mulf %23, %24 : vector<8x8xf32>
    %c1_i32 = arith.constant 1 : i32
    %26 = arith.muli %arg0, %c1_i32 : i32
    %27 = arith.addi %26, %arg1 : i32
    %c8_i32 = arith.constant 8 : i32
    %28 = arith.muli %27, %c8_i32 : i32
    %29 = tpu.iota {dimensions = array<i32: 0>} : vector<8x1xi32>
    %30 = vector.broadcast %28 : i32 to vector<8x1xi32>
    %31 = arith.addi %30, %29 : vector<8x1xi32>
    %c8_i32_6 = arith.constant 8 : i32
    %32 = vector.broadcast %c8_i32_6 : i32 to vector<8x1xi32>
    %33 = arith.cmpi slt, %31, %32 : vector<8x1xi32>
    %cst_7 = arith.constant 0.000000e+00 : f32
    %34 = vector.shape_cast %33 : vector<8x1xi1> to vector<8x1xi1>
    %35 = vector.broadcast %34 : vector<8x1xi1> to vector<8x8xi1>
    %36 = vector.broadcast %cst_7 : f32 to vector<8x8xf32>
    %37 = arith.select %35, %25, %36 : vector<8x8xi1>, vector<8x8xf32>
    %c0_8 = arith.constant 0 : index
    %c0_9 = arith.constant 0 : index
    %38 = vector.load %arg4[%c0_8, %c0_9] : memref<1x8xf32, #tpu.memory_space<vmem>>, vector<1x8xf32>
    %cst_10 = arith.constant dense<0.000000e+00> : vector<8xf32>
    %39 = vector.multi_reduction <add>, %37, %cst_10 [0] : vector<8x8xf32> to vector<8xf32>
    %40 = vector.shape_cast %39 : vector<8xf32> to vector<1x8xf32>
    %41 = arith.addf %38, %40 : vector<1x8xf32>
    %c0_11 = arith.constant 0 : index
    %c0_12 = arith.constant 0 : index
    %42 = vector.load %arg4[%c0_11, %c0_12] : memref<1x8xf32, #tpu.memory_space<vmem>>, vector<1x8xf32>
    tpu.vector_store %arg4[%c0_11, %c0_12], %41 {strides = array<i32>} : memref<1x8xf32, #tpu.memory_space<vmem>>, vector<1x8xf32>,
    %c0_i32_13 = arith.constant 0 : i32
    %43 = arith.cmpi eq, %arg1, %c0_i32_13 : i32
    %44 = arith.extui %43 : i1 to i32
    %c0_i32_14 = arith.constant 0 : i32
    %45 = arith.cmpi ne, %44, %c0_i32_14 : i32
    scf.if %45 {
      %c0_15 = arith.constant 0 : index
      %c0_16 = arith.constant 0 : index
      %46 = vector.load %arg4[%c0_15, %c0_16] : memref<1x8xf32, #tpu.memory_space<vmem>>, vector<1x8xf32>
      %47 = vector.shape_cast %46 : vector<1x8xf32> to vector<1x1x8xf32>
      %cst_17 = arith.constant dense<0.000000e+00> : vector<1xf32>
      %48 = vector.multi_reduction <add>, %47, %cst_17 [1, 2] : vector<1x1x8xf32> to vector<1xf32>
      %49 = vector.shape_cast %48 : vector<1xf32> to vector<1x1x1xf32>
      %50 = vector.extract %49[0, 0, 0] : f32 from vector<1x1x1xf32>
      %c0_18 = arith.constant 0 : index
      %c0_19 = arith.constant 0 : index
      %51 = memref.load %arg3[%c0_18, %c0_19] : memref<1x1xf32, #tpu.memory_space<smem>>
      memref.store %50, %arg3[%c0_18, %c0_19] : memref<1x1xf32, #tpu.memory_space<smem>>
    } else {
    }
    return
  }
  func.func @transform_0(%arg0: i32, %arg1: i32) -> (i32, i32) {
    %c1_i32 = arith.constant 1 : i32
    %0 = arith.muli %arg0, %c1_i32 : i32
    %1 = arith.addi %0, %arg1 : i32
    %c0_i32 = arith.constant 0 : i32
    %2 = arith.minsi %1, %c0_i32 : i32
    %c0_i32_0 = arith.constant 0 : i32
    %c0_i32_1 = arith.constant 0 : i32
    return %2, %c0_i32_0 : i32, i32
  }
  func.func @transform_1(%arg0: i32, %arg1: i32) -> (i32, i32) {
    %c0_i32 = arith.constant 0 : i32
    %c0_i32_0 = arith.constant 0 : i32
    return %arg0, %c0_i32 : i32, i32
  }
}

</mosaic_0001>

<bundles_post_ra>
// kernel: tpu_custom_call.1
= control target key start
LH: loop header
LB: loop body
LE: loop exit
PB: predicated region body
PF: predicated region fallthrough
CT: control target
= control target key end

     0   :  { %6 = vsyncpa [#allocation4], 0  ;;  %s215_s0 = inlined_call_operand.hbm [shape: f32[8,8], index: 0, kind: input, shape index: {}]   ;;  %s216_s1 = inlined_call_operand.hbm [shape: f32[1,1], index: 1, kind: output, shape index: {}]  }
   0x1   :  { %7 = vsyncpa [#allocation5], 0  ;;  %s168_s6 = smov [#allocation3]   ;;  %s132_s10 = scalar_lea.hbm %s215_s0, 128 }
   0x2   :  { %s19_s7 = sshll.u32 %s168_s6, 4  ;;  %p133_p0 = scmp.ne.s32.totalorder %s215_s0, %s132_s10  ;;  %s20_s7 = int_to_ptr.vmem [resolvable:$true] %s19_s7 }
   0x3   :  { %p136_p1 = scmp.lt.u32.totalorder %s132_s10, %s215_s0 }
   0x5   :  { %p138_p2 = pnand %p136_p1, %p133_p0 }
   0x7   :  { %141 = shalt.err (!%p138_p2)
}
   0x8   :  { %s142_s15 = scalar_lea.vmem %s20_s7, 128  ;;  %p147_p4 = scmp.lt.s32.totalorder %s20_s7, %s20_s7 }
   0x9   :  { %p143_p3 = scmp.ne.s32.totalorder %s20_s7, %s142_s15  ;;  %p148_p5 = scmp.lt.s32.totalorder %s142_s15, %s142_s15 }
   0xb   :  { %p149_p6 = por %p148_p5, %p147_p4 }
   0xd   :  { %p150_p7 = pnand %p149_p6, %p143_p3 }
   0xf   :  { %153 = shalt.err (!%p150_p7)
}
  0x10   :  { %22 = dma.hbm_to_vmem [thread:$0]  %s215_s0, 128, %s20_s7, [#allocation4]  }
  0x11   :  { %164 = dma.done.wait [#allocation4], 128  }
  0x12   :  { %165 = vsyncadd [#allocation4], 4294967168  ;;  %vm36_vm0 = vcmask 64512   ;;  %v35_v0 = vld [vmem:[#allocation3] sm:$0xff]  ;;  %s169_s0 = smov 8   ;;  %vm54_vm2 = vcmask 1047616  }
  0x13   :  { %v37_v1 = vsel %vm36_vm0, %v35_v0, -inf  ;;  %vm33_vm3 = vcmask 57344   ;;  %v170_v13 = vmov 0.0   ;;  %s171_s18 = smov 124   ;;  %s154_s22 = scalar_lea.hbm %s216_s1, 16 }
  0x14   :  { %38 = vmax.xlane.f32.xlu0 %v37_v1  ;;  %34 = vst.msk [vmem:[#allocation2] sm:$0x1] %vm33_vm3, %v170_v13  ;;  %p155_p8 = scmp.ne.s32.totalorder %s216_s1, %s154_s22  ;;  %p158_p9 = scmp.lt.u32.totalorder %s154_s22, %s216_s1 }
  0x16   :  { %p160_p10 = pnand %p158_p9, %p155_p8 }
  0x1b   :  { %v76_v28 = vld [vmem:[#allocation2] sm:$0x1] }
  0xa1   :  { %v39_v2 = vpop.xlane.xlu0 %38 }
  0xa2   :  { %v40_v3 = vsub.f32 %v35_v0, %v39_v2 }
  0xa4   :  { %v41_v4 = vmul.f32 1.442695, %v40_v3 }
  0xa6   :  { %126 = vpow2.f32 %v41_v4 }
  0xb0   :  { %v127_v5 = vpop.eup %126 }
  0xb1   :  { %v43_v6 = vsel %vm36_vm0, %v127_v5, 0.0 }
  0xb2   :  { %44 = vadd.xlane.f32.xlu0 %v43_v6 }
 0x13f   :  { %v45_v7 = vpop.xlane.xlu0 %44 }
 0x140   :  { %128 = vrcp.f32 %v45_v7 }
 0x141   :  { %130 = vlog2.f32 %v45_v7 }
 0x14a   :  { %v129_v8 = vpop.eup %128 }
 0x14b   :  { %v47_v9 = vmul.f32 %v129_v8, %v127_v5  ;;  %v131_v16 = vpop.eup %130 }
 0x14c   :  { %v49_v17 = vmul.f32 0.6931472, %v131_v16 }
 0x14d   :  { %vm51_vm1 = vcmp.eq.f32.partialorder %v47_v9, 0.0 }
 0x14e   :  { %v52_v10 = vsel %vm51_vm1, 1e-06, %v47_v9  ;;  %v50_v18 = vsub.f32 %v40_v3, %v49_v17 }
 0x14f   :  { %55 = vrot.lane.b32.xlu1 %v52_v10, %s169_s0 }
 0x150   :  { %v53_v19 = vsel %vm51_vm1, -13.815511, %v50_v18 }
 0x1c1   :  { %v56_v11 = vpop.permute.xlu1 %55 }
 0x1c2   :  { %v57_v12 = vsel %vm54_vm2, %v56_v11, %v52_v10 }
 0x1c3   :  { %58 = vrot.lane.b32.xlu1 %v57_v12, %s169_s0 }
 0x235   :  { %v59_v14 = vpop.permute.xlu1 %58 }
 0x236   :  { %v60_v15 = vsel %vm54_vm2, %v59_v14, %v52_v10 }
 0x237   :  { %62 = vrot.lane.b32.xlu0 %v60_v15, %s171_s18 }
 0x2a9   :  { %v63_v20 = vpop.permute.xlu0 %62 }
 0x2aa   :  { %v65_v21 = vmul.f32 %v63_v20, %v53_v19 }
 0x2ac   :  { %v77_v22 = vsel %vm36_vm0, %v65_v21, 0.0 }
 0x2ad   :  { %v78_v23 = vrot.slane %v77_v22, 4 }
 0x2af   :  { %v79_v24 = vadd.f32 %v78_v23, %v77_v22 }
 0x2b1   :  { %v80_v25 = vrot.slane %v79_v24, 2 }
 0x2b3   :  { %v81_v26 = vadd.f32 %v80_v25, %v79_v24 }
 0x2b5   :  { %v82_v27 = vrot.slane %v81_v26, 1 }
 0x2b7   :  { %v83_v29 = vadd.f32 %v82_v27, %v81_v26 }
 0x2b9   :  { %v84_v30 = vadd.f32 %v83_v29, %v76_v28 }
 0x2bb   :  { %86 = vst.msk [vmem:[#allocation2] sm:$0x1] %vm33_vm3, %v84_v30 }
 0x2c2   :  { %v90_v31 = vld [vmem:[#allocation2] sm:$0x1] }
 0x2c3   :  { %v91_v32 = vsel %vm33_vm3, %v90_v31, 0.0 }
 0x2c4   :  { %92 = vadd.xlane.f32.xlu1 %v91_v32 }
 0x351   :  { %v93_v33 = vpop.xlane.xlu1 %92 }
 0x352   :  { %v94_v34 = vrot.slane %v93_v33, 4 }
 0x354   :  { %v95_v35 = vadd.f32 %v94_v34, %v93_v33 }
 0x356   :  { %v96_v36 = vrot.slane %v95_v35, 2 }
 0x358   :  { %v97_v37 = vadd.f32 %v96_v36, %v95_v35 }
 0x35a   :  { %v98_v38 = vrot.slane %v97_v37, 1 }
 0x35c   :  { %v99_v39 = vadd.f32 %v98_v38, %v97_v37 }
 0x35e   :  { %119 = vpush %v99_v39 }
 0x38f   :  { %s120_s19 = spop %119 }
 0x390   :  { %102 = sst [smem:[#allocation6]] %s120_s19 }
 0x391   :  { %163 = shalt.err (!%p160_p10)
}
 0x392   :  { %s172_s27 = smov [#allocation6]  }
 0x393   :  { %110 = dma.smem_to_hbm %s172_s27, 16, %s216_s1, [#allocation5]  }
 0x394   :  { %166 = dma.done.wait [#allocation5], 16  }
 0x395   :  { %167 = vsyncadd [#allocation5], 4294967280 }
 0x396   :  { %114 = sfence }
 0x397   :  { %115 = vsyncpa [#allocation4], 1 }
 0x398   :  { %116 = vsyncpa [#allocation5], 1 }

</bundles_post_ra>
